<compile_context>
chip_gen: v5e
topology: v5e:2x2
jax: 0.10.0
libtpu: 0.0.40
codegen_flags: <defaults>
</compile_context>

<pallas_src>
import jax
import jax.numpy as jnp
import numpy as np
from jax.experimental import pallas as pl
from jax.experimental.pallas import tpu as pltpu


def _round_up(x, m):
    return ((x + m - 1) // m) * m


def _choose_token_block(T, H, D, vmem_budget_bytes=16 * 1024 * 1024):
    """Largest token tile whose double-buffered VMEM working set fits the budget."""
    hp = _round_up(H, 8)      # (8, 128) VMEM tile padding of the (H, D) slab
    dp = _round_up(D, 128)
    # double-buffered: q, k, q_out, k_out (f32, padded) + cos, sin (f32, D/2 wide)
    per_token = 2 * (4 * hp * dp * 4 + 2 * (dp // 2) * 4)
    tT = vmem_budget_bytes // per_token
    tT = max(16, min(1024, (tT // 16) * 16))
    if T <= tT:
        return T
    # Keep >= 2 grid steps so the "parallel" token axis can be sharded across the two
    # TensorCores of a v7x chip (harmless on single-core v5e/v6e).
    half_T = _round_up((T + 1) // 2, 16)
    return max(16, min(tT, half_T))


def rope_kernel(q_ref, k_ref, cos_ref, sin_ref, q_out_ref, k_out_ref):
    # q_ref/k_ref block: (tT, H, D) ; cos_ref/sin_ref block: (tT, D//2) float32.
    # Split-half RoPE: cos/sin rows are duplicated across halves in the cache, so only the
    # first D/2 columns are needed; no rotate-half shuffle of q/k is required.
    half = q_ref.shape[-1] // 2
    cos = cos_ref[...][:, None, :]          # (tT, 1, D/2) -> broadcasts over heads
    sin = sin_ref[...][:, None, :]
    for src, dst in ((q_ref, q_out_ref), (k_ref, k_out_ref)):
        x = src[...]
        x1 = x[..., :half]
        x2 = x[..., half:]
        out = jnp.concatenate([x1 * cos - x2 * sin,
                               x2 * cos + x1 * sin], axis=-1)
        dst[...] = out.astype(dst.dtype)


class RotaryEmbeddingPallas:
    def __init__(self, dim, max_position_embeddings=2048, base=10000):
        self.dim = dim
        self.max_position_embeddings = max_position_embeddings
        self.base = base
        inv_freq = 1.0 / (base ** (jnp.arange(0, dim, 2, dtype=jnp.float32) / dim))
        t = jnp.arange(max_position_embeddings, dtype=jnp.float32)
        freqs = jnp.outer(t, inv_freq)                                    # (max_pos, dim/2)
        emb = jnp.concatenate([freqs, freqs], axis=-1).astype(jnp.float16)
        # fp16 cache buffers, exactly as the torch module registers them.
        self.cos_cached = jnp.cos(emb).astype(jnp.float16)
        self.sin_cached = jnp.sin(emb).astype(jnp.float16)
        # Half-width f32 copies for the kernel stream: emb = cat(freqs, freqs) makes the two
        # halves of every cached row identical, so streaming D/2 columns is enough.
        # fp16 -> f32 cast is exact, so numerics match torch's fp32*fp16 promotion.
        half = dim // 2
        self.cos_half_f32 = self.cos_cached[:, :half].astype(jnp.float32)
        self.sin_half_f32 = self.sin_cached[:, :half].astype(jnp.float32)

    def __call__(self, q, k, positions, token_block=None, return_cos_sin=False):
        T, H, D = q.shape
        assert k.shape == (T, H, D) and positions.shape == (T,)

        # TODO(synk): data-dependent row gather (cos_cached[positions]) stays in plain JAX;
        # only the bandwidth-heavy elementwise RoPE runs in the Pallas kernel.
        cos = jnp.take(self.cos_half_f32, positions, axis=0)   # (T, D/2) f32
        sin = jnp.take(self.sin_half_f32, positions, axis=0)   # (T, D/2) f32

        tT = _choose_token_block(T, H, D) if token_block is None else min(token_block, T)
        grid = (pl.cdiv(T, tT),)

        # TODO(synk): for head_dim < 128 a head-packed (T, H//2, 128) layout would make the
        # stores lane-dense; kept (tT, H, D) blocks (dense for the common D=128 case).
        qk_spec = pl.BlockSpec((tT, H, D), lambda i: (i, 0, 0))
        cs_spec = pl.BlockSpec((tT, D // 2), lambda i: (i, 0))

        # NOTE: RoPE is often applied in place; if callers can donate q/k, add
        # input_output_aliases={0: 0, 1: 1} to save two (T, H, D) HBM allocations.
        q_out, k_out = pl.pallas_call(
            rope_kernel,
            out_shape=(jax.ShapeDtypeStruct((T, H, D), q.dtype),
                       jax.ShapeDtypeStruct((T, H, D), k.dtype)),
            grid=grid,
            in_specs=[qk_spec, qk_spec, cs_spec, cs_spec],
            out_specs=(pl.BlockSpec((tT, H, D), lambda i: (i, 0, 0)),
                       pl.BlockSpec((tT, H, D), lambda i: (i, 0, 0))),
            compiler_params=pltpu.CompilerParams(
                dimension_semantics=("parallel",),
                vmem_limit_bytes=32 * 1024 * 1024,
            ),
        )(q, k, cos, sin)

        if return_cos_sin:
            cos_full = jnp.take(self.cos_cached, positions, axis=0)[:, None, :]
            sin_full = jnp.take(self.sin_cached, positions, axis=0)[:, None, :]
            return cos_full, sin_full, q_out, k_out
        return q_out, k_out


def _rotate_half(x):
    d = x.shape[-1]
    return jnp.concatenate([-x[..., d // 2:], x[..., : d // 2]], axis=-1)


def rope_reference(q, k, positions, cos_cached, sin_cached):
    cos = cos_cached[positions].astype(jnp.float32)[:, None, :]
    sin = sin_cached[positions].astype(jnp.float32)[:, None, :]
    q_out = q * cos + _rotate_half(q) * sin
    k_out = k * cos + _rotate_half(k) * sin
    return q_out, k_out


if __name__ == "__main__":
    MAX_POS = 128
    H, D = 4, 64
    rope = RotaryEmbeddingPallas(dim=D, max_position_embeddings=MAX_POS, base=10000)

    # Check 1: small shape from the module spec (8 tokens, 4 heads, head_dim=64),
    # single grid step (whole problem resident in VMEM).
    T = 8
    kq, kk, kp = jax.random.split(jax.random.PRNGKey(0), 3)
    q = jax.random.normal(kq, (T, H, D), dtype=jnp.float32)
    k = jax.random.normal(kk, (T, H, D), dtype=jnp.float32)
    positions = jax.random.randint(kp, (T,), 0, MAX_POS, dtype=jnp.int32)

    q_out, k_out = rope(q, k, positions)
    jax.block_until_ready((q_out, k_out))
    q_ref, k_ref = rope_reference(q, k, positions, rope.cos_cached, rope.sin_cached)
    np.testing.assert_allclose(np.asarray(q_out), np.asarray(q_ref), rtol=1e-5, atol=1e-5)
    np.testing.assert_allclose(np.asarray(k_out), np.asarray(k_ref), rtol=1e-5, atol=1e-5)

    # Check 2: multi-step grid with a partial last token block (40 tokens, 16-token tiles).
    T2 = 40
    kq2, kk2, kp2 = jax.random.split(jax.random.PRNGKey(1), 3)
    q2 = jax.random.normal(kq2, (T2, H, D), dtype=jnp.float32)
    k2 = jax.random.normal(kk2, (T2, H, D), dtype=jnp.float32)
    pos2 = jax.random.randint(kp2, (T2,), 0, MAX_POS, dtype=jnp.int32)

    q2_out, k2_out = rope(q2, k2, pos2, token_block=16)
    jax.block_until_ready((q2_out, k2_out))
    q2_ref, k2_ref = rope_reference(q2, k2, pos2, rope.cos_cached, rope.sin_cached)
    np.testing.assert_allclose(np.asarray(q2_out), np.asarray(q2_ref), rtol=1e-5, atol=1e-5)
    np.testing.assert_allclose(np.asarray(k2_out), np.asarray(k2_ref), rtol=1e-5, atol=1e-5)

    print("KERNEL_OK")
</pallas_src>

<mosaic_0001>
module attributes {stable_mosaic.version = 11 : i64} {
  func.func @rope_kernel(%arg0: i32, %arg1: memref<8x4x64xf32, #tpu.memory_space<vmem>>, %arg2: memref<8x4x64xf32, #tpu.memory_space<vmem>>, %arg3: memref<8x32xf32, #tpu.memory_space<vmem>>, %arg4: memref<8x32xf32, #tpu.memory_space<vmem>>, %arg5: memref<8x4x64xf32, #tpu.memory_space<vmem>>, %arg6: memref<8x4x64xf32, #tpu.memory_space<vmem>>) attributes {dimension_semantics = [#tpu.dimension_semantics<parallel>], iteration_bounds = array<i64: 1>, scalar_prefetch = 0 : i64, scratch_operands = 0 : i64, tpu.core_type = #tpu.core_type<tc>, window_params = [{transform_indices = @transform_0, window_bounds = array<i64: 8, 4, 64>}, {transform_indices = @transform_1, window_bounds = array<i64: 8, 4, 64>}, {transform_indices = @transform_2, window_bounds = array<i64: 8, 32>}, {transform_indices = @transform_3, window_bounds = array<i64: 8, 32>}, {transform_indices = @transform_4, window_bounds = array<i64: 8, 4, 64>}, {transform_indices = @transform_5, window_bounds = array<i64: 8, 4, 64>}]} {
    %c0 = arith.constant 0 : index
    %c0_0 = arith.constant 0 : index
    %0 = vector.load %arg3[%c0, %c0_0] : memref<8x32xf32, #tpu.memory_space<vmem>>, vector<8x32xf32>
    %1 = vector.shape_cast %0 : vector<8x32xf32> to vector<8x1x32xf32>
    %c0_1 = arith.constant 0 : index
    %c0_2 = arith.constant 0 : index
    %2 = vector.load %arg4[%c0_1, %c0_2] : memref<8x32xf32, #tpu.memory_space<vmem>>, vector<8x32xf32>
    %3 = vector.shape_cast %2 : vector<8x32xf32> to vector<8x1x32xf32>
    %c0_3 = arith.constant 0 : index
    %c0_4 = arith.constant 0 : index
    %c0_5 = arith.constant 0 : index
    %4 = vector.load %arg1[%c0_3, %c0_4, %c0_5] : memref<8x4x64xf32, #tpu.memory_space<vmem>>, vector<8x4x64xf32>
    %5 = vector.extract_strided_slice %4 {offsets = [0, 0, 0], sizes = [8, 4, 32], strides = [1, 1, 1]} : vector<8x4x64xf32> to vector<8x4x32xf32>
    %6 = vector.extract_strided_slice %4 {offsets = [0, 0, 32], sizes = [8, 4, 32], strides = [1, 1, 1]} : vector<8x4x64xf32> to vector<8x4x32xf32>
    %7 = vector.broadcast %1 : vector<8x1x32xf32> to vector<8x4x32xf32>
    %8 = arith.mulf %5, %7 : vector<8x4x32xf32>
    %9 = vector.broadcast %3 : vector<8x1x32xf32> to vector<8x4x32xf32>
    %10 = arith.mulf %6, %9 : vector<8x4x32xf32>
    %11 = arith.subf %8, %10 : vector<8x4x32xf32>
    %12 = vector.broadcast %1 : vector<8x1x32xf32> to vector<8x4x32xf32>
    %13 = arith.mulf %6, %12 : vector<8x4x32xf32>
    %14 = vector.broadcast %3 : vector<8x1x32xf32> to vector<8x4x32xf32>
    %15 = arith.mulf %5, %14 : vector<8x4x32xf32>
    %16 = arith.addf %13, %15 : vector<8x4x32xf32>
    %17 = tpu.concatenate %11, %16 in 2 : vector<8x4x32xf32>, vector<8x4x32xf32> -> vector<8x4x64xf32>
    %c0_6 = arith.constant 0 : index
    %c0_7 = arith.constant 0 : index
    %c0_8 = arith.constant 0 : index
    %18 = vector.load %arg5[%c0_6, %c0_7, %c0_8] : memref<8x4x64xf32, #tpu.memory_space<vmem>>, vector<8x4x64xf32>
    tpu.vector_store %arg5[%c0_6, %c0_7, %c0_8], %17 {strides = array<i32>} : memref<8x4x64xf32, #tpu.memory_space<vmem>>, vector<8x4x64xf32>,
    %c0_9 = arith.constant 0 : index
    %c0_10 = arith.constant 0 : index
    %c0_11 = arith.constant 0 : index
    %19 = vector.load %arg2[%c0_9, %c0_10, %c0_11] : memref<8x4x64xf32, #tpu.memory_space<vmem>>, vector<8x4x64xf32>
    %20 = vector.extract_strided_slice %19 {offsets = [0, 0, 0], sizes = [8, 4, 32], strides = [1, 1, 1]} : vector<8x4x64xf32> to vector<8x4x32xf32>
    %21 = vector.extract_strided_slice %19 {offsets = [0, 0, 32], sizes = [8, 4, 32], strides = [1, 1, 1]} : vector<8x4x64xf32> to vector<8x4x32xf32>
    %22 = vector.broadcast %1 : vector<8x1x32xf32> to vector<8x4x32xf32>
    %23 = arith.mulf %20, %22 : vector<8x4x32xf32>
    %24 = vector.broadcast %3 : vector<8x1x32xf32> to vector<8x4x32xf32>
    %25 = arith.mulf %21, %24 : vector<8x4x32xf32>
    %26 = arith.subf %23, %25 : vector<8x4x32xf32>
    %27 = vector.broadcast %1 : vector<8x1x32xf32> to vector<8x4x32xf32>
    %28 = arith.mulf %21, %27 : vector<8x4x32xf32>
    %29 = vector.broadcast %3 : vector<8x1x32xf32> to vector<8x4x32xf32>
    %30 = arith.mulf %20, %29 : vector<8x4x32xf32>
    %31 = arith.addf %28, %30 : vector<8x4x32xf32>
    %32 = tpu.concatenate %26, %31 in 2 : vector<8x4x32xf32>, vector<8x4x32xf32> -> vector<8x4x64xf32>
    %c0_12 = arith.constant 0 : index
    %c0_13 = arith.constant 0 : index
    %c0_14 = arith.constant 0 : index
    %33 = vector.load %arg6[%c0_12, %c0_13, %c0_14] : memref<8x4x64xf32, #tpu.memory_space<vmem>>, vector<8x4x64xf32>
    tpu.vector_store %arg6[%c0_12, %c0_13, %c0_14], %32 {strides = array<i32>} : memref<8x4x64xf32, #tpu.memory_space<vmem>>, vector<8x4x64xf32>,
    return
  }
  func.func @transform_0(%arg0: i32) -> (i32, i32, i32) {
    %c0_i32 = arith.constant 0 : i32
    %c0_i32_0 = arith.constant 0 : i32
    %c0_i32_1 = arith.constant 0 : i32
    return %arg0, %c0_i32, %c0_i32_0 : i32, i32, i32
  }
  func.func @transform_1(%arg0: i32) -> (i32, i32, i32) {
    %c0_i32 = arith.constant 0 : i32
    %c0_i32_0 = arith.constant 0 : i32
    %c0_i32_1 = arith.constant 0 : i32
    return %arg0, %c0_i32, %c0_i32_0 : i32, i32, i32
  }
  func.func @transform_2(%arg0: i32) -> (i32, i32) {
    %c0_i32 = arith.constant 0 : i32
    %c0_i32_0 = arith.constant 0 : i32
    return %arg0, %c0_i32 : i32, i32
  }
  func.func @transform_3(%arg0: i32) -> (i32, i32) {
    %c0_i32 = arith.constant 0 : i32
    %c0_i32_0 = arith.constant 0 : i32
    return %arg0, %c0_i32 : i32, i32
  }
  func.func @transform_4(%arg0: i32) -> (i32, i32, i32) {
    %c0_i32 = arith.constant 0 : i32
    %c0_i32_0 = arith.constant 0 : i32
    %c0_i32_1 = arith.constant 0 : i32
    return %arg0, %c0_i32, %c0_i32_0 : i32, i32, i32
  }
  func.func @transform_5(%arg0: i32) -> (i32, i32, i32) {
    %c0_i32 = arith.constant 0 : i32
    %c0_i32_0 = arith.constant 0 : i32
    %c0_i32_1 = arith.constant 0 : i32
    return %arg0, %c0_i32, %c0_i32_0 : i32, i32, i32
  }
}

</mosaic_0001>

<bundles_post_ra>
// kernel: tpu_custom_call.1
= control target key start
LH: loop header
LB: loop body
LE: loop exit
PB: predicated region body
PF: predicated region fallthrough
CT: control target
= control target key end

     0   :  { %11 = vsyncpa [#allocation3], 0  ;;  %s1018_s0 = inlined_call_operand.hbm [shape: f32[8,4,64], index: 0, kind: input, shape index: {}]   ;;  %s1019_s1 = inlined_call_operand.hbm [shape: f32[8,4,64], index: 1, kind: input, shape index: {}]   ;;  %s1020_s2 = inlined_call_operand.hbm [shape: f32[8,32], index: 2, kind: input, shape index: {}]   ;;  %s1021_s3 = inlined_call_operand.hbm [shape: f32[8,32], index: 3, kind: input, shape index: {}]   ;;  %s1022_s4 = inlined_call_operand.hbm [shape: f32[8,4,64], index: 4, kind: output, shape index: {0}]   ;;  %s1023_s5 = inlined_call_operand.hbm [shape: f32[8,4,64], index: 5, kind: output, shape index: {1}]  }
   0x1   :  { %12 = vsyncpa [#allocation6], 0 }
   0x2   :  { %13 = vsyncpa [#allocation9], 0 }
   0x3   :  { %14 = vsyncpa [#allocation4], 0 }
   0x4   :  { %15 = vsyncpa [#allocation12], 0  ;;  %s33_s20 = sshll.u32 %s1019_s1, 4  ;;  %s655_s21 = smov [#allocation5]   ;;  %s34_s20 = int_to_ptr.hbm [resolvable:$true] %s33_s20 }
   0x5   :  { %s35_s22 = sshll.u32 %s655_s21, 4  ;;  %s20_s25 = sshll.u32 %s1018_s0, 4  ;;  %s36_s22 = int_to_ptr.vmem [resolvable:$true] %s35_s22  ;;  %s21_s25 = int_to_ptr.hbm [resolvable:$true] %s20_s25 }
   0x6   :  { %s656_s26 = smov 64   ;;  %s657_s27 = smov 4  }
   0x7   :  { %41 = dma.hbm_to_vmem [thread:$0]  %s34_s20, 512, %s36_s22, [#allocation6], %s656_s26, %s656_s26, %s657_s27  }
   0x8   :  { %s658_s28 = smov [#allocation2]   ;;  %s47_s1 = sshll.u32 %s1020_s2, 4  ;;  %s48_s1 = int_to_ptr.hbm [resolvable:$true] %s47_s1 }
   0x9   :  { %s22_s29 = sshll.u32 %s658_s28, 4  ;;  %s58_s8 = sshll.u32 %s1021_s3, 4  ;;  %s23_s29 = int_to_ptr.vmem [resolvable:$true] %s22_s29  ;;  %s59_s8 = int_to_ptr.hbm [resolvable:$true] %s58_s8 }
   0xa   :  { %28 = dma.hbm_to_vmem [thread:$0]  %s21_s25, 512, %s23_s29, [#allocation3], %s656_s26, %s656_s26, %s657_s27  }
   0xb   :  { %s659_s9 = smov [#allocation7]   ;;  %s660_s11 = smov [#allocation8]  }
   0xc   :  { %s49_s10 = sshll.u32 %s659_s9, 4  ;;  %s60_s12 = sshll.u32 %s660_s11, 4  ;;  %s50_s10 = int_to_ptr.vmem [resolvable:$true] %s49_s10  ;;  %s61_s12 = int_to_ptr.vmem [resolvable:$true] %s60_s12 }
   0xd   :  { %52 = dma.hbm_to_vmem [thread:$0]  %s48_s1, 128, %s50_s10, [#allocation6]  }
   0xe   :  { %63 = dma.hbm_to_vmem [thread:$0]  %s59_s8, 128, %s61_s12, [#allocation9]  }
   0xf   :  { %645 = dma.done.wait [#allocation3], 512  }
  0x10   :  { %646 = vsyncadd [#allocation3], 4294966784 }
  0x11   :  { %647 = dma.done.wait [#allocation6], 640  }
  0x12   :  { %648 = vsyncadd [#allocation6], 4294966656 }
  0x13   :  { %649 = dma.done.wait [#allocation9], 128  }
  0x14   :  { %650 = vsyncadd [#allocation9], 4294967168  ;;  %v89_v0 = vld [vmem:[#allocation8] sm:$0xff]  ;;  %s661_s2 = smov 32   ;;  %v80_v16 = vld [vmem:[#allocation7] sm:$0xff]  ;;  %s662_s3 = smov 96  }
  0x15   :  { %v713_v1 = vperm.slane %v89_v0, 0  ;;  %v92_v2 = vrot.slane %v89_v0, 2  ;;  %v94_v3 = vrot.slane %v89_v0, 4  ;;  %v91_v5 = vrot.slane %v89_v0, 1  ;;  %v764_v28 = vld [vmem:[#allocation2] sm:$0xf] }
  0x16   :  { %v93_v7 = vrot.slane %v89_v0, 3  ;;  %v95_v8 = vrot.slane %v89_v0, 5  ;;  %v96_v12 = vrot.slane %v89_v0, 6  ;;  %v97_v13 = vrot.slane %v89_v0, 7  ;;  %v777_v34 = vld [vmem:[#allocation2 + $0xc] sm:$0xf] }
  0x17   :  { %146 = vrot.lane.b32.xlu0 %v713_v1, %s661_s2  ;;  %v717_v4 = vperm.slane %v92_v2, 0  ;;  %v719_v6 = vperm.slane %v94_v3, 0  ;;  %v131_v9 = vperm.slane %v91_v5, 0  ;;  %v83_v17 = vrot.slane %v80_v16, 2  ;;  %v781_v35 = vld [vmem:[#allocation2 + $0x8] sm:$0xf] }
  0x18   :  { %v725_v10 = vperm.slane %v93_v7, 0  ;;  %v727_v11 = vperm.slane %v95_v8, 0  ;;  %v734_v14 = vperm.slane %v96_v12, 0  ;;  %v736_v15 = vperm.slane %v97_v13, 0  ;;  %v783_v36 = vld [vmem:[#allocation2 + $0x4] sm:$0xf] }
  0x19   :  { %150 = vrot.lane.b32.xlu1 %v717_v4, %s661_s2  ;;  %154 = vrot.lane.b32.xlu2 %v719_v6, %s661_s2  ;;  %v82_v18 = vrot.slane %v80_v16, 1  ;;  %v742_v19 = vperm.slane %v83_v17, 0  ;;  %v746_v21 = vperm.slane %v80_v16, 0  ;;  %v86_v22 = vrot.slane %v80_v16, 5  ;;  %v792_v40 = vld [vmem:[#allocation2 + $0x18] sm:$0xf] }
  0x1a   :  { %v84_v23 = vrot.slane %v80_v16, 3  ;;  %v85_v24 = vrot.slane %v80_v16, 4  ;;  %v87_v29 = vrot.slane %v80_v16, 6  ;;  %v88_v30 = vrot.slane %v80_v16, 7  ;;  %v795_v41 = vld [vmem:[#allocation2 + $0x14] sm:$0xf] }
  0x1b   :  { %v744_v20 = vperm.slane %v82_v18, 0  ;;  %v754_v25 = vperm.slane %v86_v22, 0  ;;  %v250_v31 = vmul.f32 %v713_v1, %v764_v28  ;;  %v252_v37 = vmul.f32 %v717_v4, %v781_v35  ;;  %v797_v42 = vld [vmem:[#allocation2 + $0x10] sm:$0xf]  ;;  %v806_v46 = vld [vmem:[#allocation5 + $0x4] sm:$0xf] }
  0x1c   :  { %v756_v26 = vperm.slane %v85_v24, 0  ;;  %v758_v27 = vperm.slane %v84_v23, 0  ;;  %v770_v32 = vperm.slane %v88_v30, 0  ;;  %v772_v33 = vperm.slane %v87_v29, 0  ;;  %v809_v47 = vld [vmem:[#allocation5 + $0x8] sm:$0xf] }
  0x1d   :  { %v253_v38 = vmul.f32 %v725_v10, %v777_v34  ;;  %v251_v39 = vmul.f32 %v131_v9, %v783_v36  ;;  %v255_v43 = vmul.f32 %v727_v11, %v795_v41  ;;  %v256_v44 = vmul.f32 %v734_v14, %v792_v40  ;;  %v813_v49 = vld [vmem:[#allocation2 + $0x1c] sm:$0xf]  ;;  %v820_v52 = vld [vmem:[#allocation5 + $0x10] sm:$0xf]  ;;  %v826_v54 = vld [vmem:[#allocation5] sm:$0xf] }
  0x1e   :  { %v254_v45 = vmul.f32 %v719_v6, %v797_v42  ;;  %v389_v48 = vmul.f32 %v806_v46, %v131_v9  ;;  %v390_v50 = vmul.f32 %v809_v47, %v717_v4  ;;  %v257_v51 = vmul.f32 %v736_v15, %v813_v49  ;;  %v832_v56 = vld [vmem:[#allocation5 + $0xc] sm:$0xf]  ;;  %v859_v16 = vld [vmem:[#allocation5 + $0x14] sm:$0xf]  ;;  %v869_v24 = vld [vmem:[#allocation5 + $0x18] sm:$0xf] }
  0x1f   :  { %148 = vrot.lane.b32.xlu0 %v131_v9, %s661_s2  ;;  %v392_v53 = vmul.f32 %v820_v52, %v719_v6  ;;  %v388_v55 = vmul.f32 %v826_v54, %v713_v1  ;;  %v391_v57 = vmul.f32 %v832_v56, %v725_v10  ;;  %vm298_vm0 = vcmask 261120   ;;  %s663_s13 = smov [#allocation10]   ;;  %s458_s17 = sshll.u32 %s1022_s4, 4  ;;  %s459_s17 = int_to_ptr.hbm [resolvable:$true] %s458_s17 }
  0x20   :  { %vm307_vm1 = vcmask 519168   ;;  %s456_s14 = sshll.u32 %s663_s13, 4  ;;  %s664_s4 = smov [#allocation11]   ;;  %s457_s14 = int_to_ptr.vmem [resolvable:$true] %s456_s14 }
  0x21   :  { %152 = vrot.lane.b32.xlu1 %v725_v10, %s661_s2  ;;  %156 = vrot.lane.b32.xlu2 %v727_v11, %s661_s2  ;;  %s469_s18 = sshll.u32 %s664_s4, 4  ;;  %s471_s21 = sshll.u32 %s1023_s5, 4  ;;  %s470_s18 = int_to_ptr.vmem [resolvable:$true] %s469_s18  ;;  %s472_s21 = int_to_ptr.hbm [resolvable:$true] %s471_s21 }
  0x27   :  { %158 = vrot.lane.b32.xlu0 %v734_v14, %s661_s2 }
  0x29   :  { %160 = vrot.lane.b32.xlu1 %v736_v15, %s661_s2  ;;  %220 = vrot.lane.b32.xlu2 %v744_v20, %s661_s2 }
  0x2f   :  { %222 = vrot.lane.b32.xlu0 %v742_v19, %s661_s2 }
  0x31   :  { %218 = vrot.lane.b32.xlu1 %v746_v21, %s661_s2  ;;  %226 = vrot.lane.b32.xlu2 %v756_v26, %s661_s2 }
  0x37   :  { %228 = vrot.lane.b32.xlu0 %v754_v25, %s661_s2 }
  0x39   :  { %224 = vrot.lane.b32.xlu1 %v758_v27, %s661_s2  ;;  %232 = vrot.lane.b32.xlu2 %v770_v32, %s661_s2 }
  0x3f   :  { %266 = vrot.lane.b32.xlu0 %v250_v31, %s661_s2 }
  0x41   :  { %230 = vrot.lane.b32.xlu1 %v772_v33, %s661_s2  ;;  %270 = vrot.lane.b32.xlu2 %v252_v37, %s661_s2  ;;  %v394_v37 = vmul.f32 %v869_v24, %v734_v14 }
  0x47   :  { %272 = vrot.lane.b32.xlu0 %v253_v38, %s661_s2 }
  0x49   :  { %268 = vrot.lane.b32.xlu1 %v251_v39, %s661_s2  ;;  %276 = vrot.lane.b32.xlu2 %v255_v43, %s661_s2 }
  0x4f   :  { %278 = vrot.lane.b32.xlu0 %v256_v44, %s661_s2 }
  0x51   :  { %274 = vrot.lane.b32.xlu1 %v254_v45, %s661_s2  ;;  %406 = vrot.lane.b32.xlu2 %v389_v48, %s661_s2 }
  0x57   :  { %408 = vrot.lane.b32.xlu0 %v390_v50, %s661_s2  ;;  %v890_v50 = vld [vmem:[#allocation5 + $0x1c] sm:$0xf] }
  0x59   :  { %280 = vrot.lane.b32.xlu1 %v257_v51, %s661_s2  ;;  %412 = vrot.lane.b32.xlu2 %v392_v53, %s661_s2  ;;  %v395_v53 = vmul.f32 %v890_v50, %v736_v15 }
  0x61   :  { %404 = vrot.lane.b32.xlu1 %v388_v55, %s661_s2 }
  0x69   :  { %410 = vrot.lane.b32.xlu1 %v391_v57, %s661_s2 }
  0x73   :  { %v155_v58 = vpop.permute.xlu2 %154 }
  0x74   :  { %v174_v8 = vmul.f32 %v155_v58, %v797_v42  ;;  %v336_v48 = vmul.f32 %v820_v52, %v155_v58  ;;  %v393_v58 = vmul.f32 %v859_v16, %v727_v11 }
  0x7b   :  { %v157_v59 = vpop.permute.xlu2 %156 }
  0x7c   :  { %v175_v5 = vmul.f32 %v157_v59, %v795_v41  ;;  %v337_v23 = vmul.f32 %v859_v16, %v157_v59 }
  0x83   :  { %v837_v60 = vpop.permute.xlu2 %220 }
  0x84   :  { %v381_v38 = vmul.f32 %v806_v46, %v837_v60 }
  0x89   :  { %v147_v61 = vpop.permute.xlu0 %146 }
  0x8a   :  { %v170_v62 = vmul.f32 %v147_v61, %v764_v28  ;;  %v332_v3 = vmul.f32 %v826_v54, %v147_v61 }
  0x8b   :  { %v151_v63 = vpop.permute.xlu1 %150  ;;  %v843_v1 = vpop.permute.xlu2 %226 }
  0x8c   :  { %v172_v0 = vmul.f32 %v151_v63, %v781_v35  ;;  %186 = vrot.lane.b32.xlu2 %v170_v62, %s662_s3  ;;  %v334_v10 = vmul.f32 %v809_v47, %v151_v63  ;;  %v384_v14 = vmul.f32 %v820_v52, %v843_v1 }
  0x8e   :  { %190 = vrot.lane.b32.xlu1 %v172_v0, %s662_s3 }
  0x91   :  { %v149_v2 = vpop.permute.xlu0 %148 }
  0x92   :  { %v171_v4 = vmul.f32 %v149_v2, %v783_v36  ;;  %v333_v30 = vmul.f32 %v806_v46, %v149_v2 }
  0x93   :  { %v153_v6 = vpop.permute.xlu1 %152  ;;  %v851_v7 = vpop.permute.xlu2 %232 }
  0x94   :  { %188 = vrot.lane.b32.xlu0 %v171_v4, %s662_s3  ;;  %348 = vrot.lane.b32.xlu2 %v332_v3, %s662_s3  ;;  %v173_v9 = vmul.f32 %v153_v6, %v777_v34  ;;  %v335_v31 = vmul.f32 %v832_v56, %v153_v6 }
  0x96   :  { %196 = vrot.lane.b32.xlu1 %v175_v5, %s662_s3  ;;  %v122_v5 = vmul.f32 %v746_v21, %v764_v28 }
  0x99   :  { %v159_v13 = vpop.permute.xlu0 %158 }
  0x9a   :  { %v176_v22 = vmul.f32 %v159_v13, %v792_v40  ;;  %v338_v43 = vmul.f32 %v869_v24, %v159_v13  ;;  %v324_v13 = vmul.f32 %v826_v54, %v746_v21 }
  0x9b   :  { %v161_v12 = vpop.permute.xlu1 %160  ;;  %v861_v17 = vpop.permute.xlu2 %270 }
  0x9c   :  { %194 = vrot.lane.b32.xlu0 %v174_v8, %s662_s3  ;;  %192 = vrot.lane.b32.xlu2 %v173_v9, %s662_s3  ;;  %v177_v18 = vmul.f32 %v161_v12, %v813_v49  ;;  %v339_v57 = vmul.f32 %v890_v50, %v161_v12 }
  0x9e   :  { %352 = vrot.lane.b32.xlu1 %v334_v10, %s662_s3 }
  0xa1   :  { %v904_v62 = vpop.permute.xlu0 %222 }
  0xa3   :  { %v871_v29 = vpop.permute.xlu2 %276  ;;  %v219_v44 = vpop.permute.xlu1 %218 }
  0xa4   :  { %200 = vrot.lane.b32.xlu0 %v177_v18, %s662_s3  ;;  %198 = vrot.lane.b32.xlu2 %v176_v22, %s662_s3  ;;  %v242_v4 = vmul.f32 %v219_v44, %v764_v28  ;;  %v380_v12 = vmul.f32 %v826_v54, %v219_v44 }
  0xa6   :  { %358 = vrot.lane.b32.xlu1 %v337_v23, %s662_s3 }
  0xa9   :  { %v906_v15 = vpop.permute.xlu0 %228 }
  0xab   :  { %v407_v39 = vpop.permute.xlu2 %406  ;;  %v225_v59 = vpop.permute.xlu1 %224 }
  0xac   :  { %350 = vrot.lane.b32.xlu0 %v333_v30, %s662_s3  ;;  %354 = vrot.lane.b32.xlu2 %v335_v31, %s662_s3  ;;  %v883_v45 = vadd.f32 %v407_v39, %v381_v38  ;;  %v245_v31 = vmul.f32 %v225_v59, %v777_v34 }
  0xae   :  { %416 = vrot.lane.b32.xlu1 %v394_v37, %s661_s2  ;;  %v125_v37 = vmul.f32 %v758_v27, %v777_v34  ;;  %v124_v34 = vmul.f32 %v742_v19, %v781_v35 }
  0xb1   :  { %v267_v2 = vpop.permute.xlu0 %266 }
  0xb2   :  { %v290_v6 = vadd.f32 %v267_v2, %v242_v4 }
  0xb3   :  { %v413_v51 = vpop.permute.xlu2 %412  ;;  %v901_v61 = vpop.permute.xlu1 %230 }
  0xb4   :  { %356 = vrot.lane.b32.xlu0 %v336_v48, %s662_s3  ;;  %360 = vrot.lane.b32.xlu2 %v338_v43, %s662_s3  ;;  %v894_v55 = vadd.f32 %v413_v51, %v384_v14  ;;  %v248_v54 = vmul.f32 %v901_v61, %v792_v40  ;;  %v128_v14 = vmul.f32 %v772_v33, %v792_v40 }
  0xb5   :  { %v244_v51 = vmul.f32 %v904_v62, %v781_v35  ;;  %v383_v40 = vmul.f32 %v832_v56, %v225_v59  ;;  %v123_v35 = vmul.f32 %v744_v20, %v783_v36 }
  0xb9   :  { %v273_v10 = vpop.permute.xlu0 %272 }
  0xba   :  { %v293_v43 = vadd.f32 %v273_v10, %v245_v31  ;;  %v327_v10 = vmul.f32 %v832_v56, %v758_v27  ;;  %v246_v31 = vmul.f32 %v843_v1, %v797_v42 }
  0xbb   :  { %v269_v63 = vpop.permute.xlu1 %268 }
  0xbc   :  { %362 = vrot.lane.b32.xlu0 %v339_v57, %s662_s3  ;;  %418 = vrot.lane.b32.xlu2 %v395_v53, %s661_s2 }
  0xc1   :  { %v279_v38 = vpop.permute.xlu0 %278 }
  0xc3   :  { %v908_v0 = vpop.permute.xlu1 %274 }
  0xc4   :  { %414 = vrot.lane.b32.xlu0 %v393_v58, %s661_s2  ;;  %v296_v58 = vadd.f32 %v279_v38, %v248_v54 }
  0xc9   :  { %v409_v53 = vpop.permute.xlu0 %408 }
  0xcb   :  { %v910_v3 = vpop.permute.xlu1 %280 }
  0xd3   :  { %v405_v18 = vpop.permute.xlu1 %404 }
  0xd4   :  { %v428_v23 = vadd.f32 %v405_v18, %v380_v12 }
  0xdb   :  { %v411_v48 = vpop.permute.xlu1 %410 }
  0xdc   :  { %v431_v59 = vadd.f32 %v411_v48, %v383_v40 }
  0xe6   :  { %v187_v11 = vpop.permute.xlu2 %186 }
  0xe7   :  { %v210_v8 = vsub.f32 %v122_v5, %v187_v11  ;;  %v292_v5 = vadd.f32 %v861_v17, %v244_v51  ;;  %v247_v17 = vmul.f32 %v906_v15, %v795_v41 }
  0xe9   :  { %v299_v9 = vsel %vm298_vm0, %v210_v8, %v290_v6  ;;  %v243_v8 = vmul.f32 %v837_v60, %v783_v36  ;;  %v127_v60 = vmul.f32 %v754_v25, %v795_v41  ;;  %v295_v36 = vadd.f32 %v871_v29, %v247_v17 }
  0xea   :  { %308 = vst.msk [vmem:[#allocation10] sm:$0xf] %vm307_vm1, %v299_v9  ;;  %v382_v29 = vmul.f32 %v809_v47, %v904_v62  ;;  %v129_v62 = vmul.f32 %v770_v32, %v813_v49 }
  0xeb   :  { %v291_v18 = vadd.f32 %v269_v63, %v243_v8  ;;  %v126_v63 = vmul.f32 %v756_v26, %v797_v42  ;;  %v249_v42 = vmul.f32 %v851_v7, %v813_v49  ;;  %v325_v49 = vmul.f32 %v806_v46, %v744_v20 }
  0xec   :  { %v328_v46 = vmul.f32 %v820_v52, %v756_v26  ;;  %v387_v8 = vmul.f32 %v890_v50, %v851_v7  ;;  %v329_v52 = vmul.f32 %v859_v16, %v754_v25 }
  0xee   :  { %v349_v22 = vpop.permute.xlu2 %348 }
  0xef   :  { %v372_v30 = vsub.f32 %v324_v13, %v349_v22 }
  0xf1   :  { %v436_v28 = vsel %vm298_vm0, %v372_v30, %v428_v23 }
  0xf2   :  { %444 = vst.msk [vmem:[#allocation11] sm:$0xf] %vm307_vm1, %v436_v28 }
  0xf6   :  { %v193_v39 = vpop.permute.xlu2 %192 }
  0xf7   :  { %v213_v44 = vsub.f32 %v125_v37, %v193_v39  ;;  %v326_v37 = vmul.f32 %v809_v47, %v742_v19  ;;  %v294_v39 = vadd.f32 %v908_v0, %v246_v31  ;;  %v297_v47 = vadd.f32 %v910_v3, %v249_v42 }
  0xf8   :  { %v386_v3 = vmul.f32 %v869_v24, %v901_v61 }
  0xf9   :  { %v302_v21 = vsel %vm298_vm0, %v213_v44, %v293_v43  ;;  %v430_v44 = vadd.f32 %v409_v53, %v382_v29 }
  0xfa   :  { %311 = vst.msk [vmem:[#allocation10 + $0xc] sm:$0xf] %vm307_vm1, %v302_v21 }
  0xfe   :  { %v199_v57 = vpop.permute.xlu2 %198 }
  0xff   :  { %v216_v2 = vsub.f32 %v128_v14, %v199_v57 }
 0x100   :  { %v191_v4 = vpop.permute.xlu1 %190 }
 0x101   :  { %v305_v11 = vsel %vm298_vm0, %v216_v2, %v296_v58  ;;  %v212_v6 = vsub.f32 %v124_v34, %v191_v4  ;;  %v330_v34 = vmul.f32 %v869_v24, %v772_v33 }
 0x102   :  { %314 = vst.msk [vmem:[#allocation10 + $0x18] sm:$0xf] %vm307_vm1, %v305_v11 }
 0x103   :  { %v301_v9 = vsel %vm298_vm0, %v212_v6, %v292_v5 }
 0x104   :  { %310 = vst.msk [vmem:[#allocation10 + $0x8] sm:$0xf] %vm307_vm1, %v301_v9 }
 0x106   :  { %v189_v12 = vpop.permute.xlu0 %188  ;;  %v355_v13 = vpop.permute.xlu2 %354 }
 0x107   :  { %v211_v22 = vsub.f32 %v123_v35, %v189_v12  ;;  %v375_v23 = vsub.f32 %v327_v10, %v355_v13 }
 0x108   :  { %v197_v30 = vpop.permute.xlu1 %196 }
 0x109   :  { %v300_v28 = vsel %vm298_vm0, %v211_v22, %v291_v18  ;;  %v439_v27 = vsel %vm298_vm0, %v375_v23, %v431_v59  ;;  %v215_v56 = vsub.f32 %v127_v60, %v197_v30 }
 0x10a   :  { %309 = vst.msk [vmem:[#allocation10 + $0x4] sm:$0xf] %vm307_vm1, %v300_v28 }
 0x10b   :  { %447 = vst.msk [vmem:[#allocation11 + $0xc] sm:$0xf] %vm307_vm1, %v439_v27  ;;  %v304_v41 = vsel %vm298_vm0, %v215_v56, %v295_v36 }
 0x10c   :  { %313 = vst.msk [vmem:[#allocation10 + $0x14] sm:$0xf] %vm307_vm1, %v304_v41 }
 0x10e   :  { %v195_v38 = vpop.permute.xlu0 %194  ;;  %v361_v58 = vpop.permute.xlu2 %360 }
 0x10f   :  { %v214_v43 = vsub.f32 %v126_v63, %v195_v38  ;;  %v378_v4 = vsub.f32 %v330_v34, %v361_v58 }
 0x110   :  { %v353_v1 = vpop.permute.xlu1 %352 }
 0x111   :  { %v303_v48 = vsel %vm298_vm0, %v214_v43, %v294_v39  ;;  %v374_v21 = vsub.f32 %v326_v37, %v353_v1 }
 0x112   :  { %312 = vst.msk [vmem:[#allocation10 + $0x10] sm:$0xf] %vm307_vm1, %v303_v48 }
 0x113   :  { %v438_v54 = vsel %vm298_vm0, %v374_v21, %v430_v44 }
 0x114   :  { %446 = vst.msk [vmem:[#allocation11 + $0x8] sm:$0xf] %vm307_vm1, %v438_v54 }
 0x116   :  { %v201_v19 = vpop.permute.xlu0 %200  ;;  %v419_v61 = vpop.permute.xlu2 %418 }
 0x117   :  { %v217_v0 = vsub.f32 %v129_v62, %v201_v19  ;;  %v435_v9 = vadd.f32 %v419_v61, %v387_v8 }
 0x118   :  { %v359_v14 = vpop.permute.xlu1 %358 }
 0x119   :  { %v306_v51 = vsel %vm298_vm0, %v217_v0, %v297_v47  ;;  %v377_v7 = vsub.f32 %v329_v52, %v359_v14 }
 0x11a   :  { %315 = vst.msk [vmem:[#allocation10 + $0x1c] sm:$0xf] %vm307_vm1, %v306_v51 }
 0x11b   :  { %464 = dma.vmem_to_hbm [thread:$0]  %s457_s14, 512, %s459_s17, [#allocation4], %s656_s26, %s656_s26, %s657_s27  }
 0x11e   :  { %v351_v53 = vpop.permute.xlu0 %350 }
 0x11f   :  { %v373_v57 = vsub.f32 %v325_v49, %v351_v53 }
 0x120   :  { %v417_v2 = vpop.permute.xlu1 %416 }
 0x121   :  { %v437_v5 = vsel %vm298_vm0, %v373_v57, %v883_v45  ;;  %v434_v11 = vadd.f32 %v417_v2, %v386_v3  ;;  %v331_v45 = vmul.f32 %v890_v50, %v770_v32 }
 0x122   :  { %445 = vst.msk [vmem:[#allocation11 + $0x4] sm:$0xf] %vm307_vm1, %v437_v5 }
 0x123   :  { %v442_v20 = vsel %vm298_vm0, %v378_v4, %v434_v11 }
 0x124   :  { %450 = vst.msk [vmem:[#allocation11 + $0x18] sm:$0xf] %vm307_vm1, %v442_v20 }
 0x126   :  { %v357_v33 = vpop.permute.xlu0 %356 }
 0x127   :  { %v376_v6 = vsub.f32 %v328_v46, %v357_v33 }
 0x129   :  { %v440_v24 = vsel %vm298_vm0, %v376_v6, %v894_v55  ;;  %v385_v55 = vmul.f32 %v859_v16, %v906_v15 }
 0x12a   :  { %448 = vst.msk [vmem:[#allocation11 + $0x10] sm:$0xf] %vm307_vm1, %v440_v24 }
 0x12e   :  { %v363_v40 = vpop.permute.xlu0 %362 }
 0x12f   :  { %v379_v35 = vsub.f32 %v331_v45, %v363_v40 }
 0x131   :  { %v443_v26 = vsel %vm298_vm0, %v379_v35, %v435_v9 }
 0x132   :  { %451 = vst.msk [vmem:[#allocation11 + $0x1c] sm:$0xf] %vm307_vm1, %v443_v26 }
 0x136   :  { %v415_v32 = vpop.permute.xlu0 %414 }
 0x137   :  { %v433_v50 = vadd.f32 %v415_v32, %v385_v55 }
 0x139   :  { %v441_v10 = vsel %vm298_vm0, %v377_v7, %v433_v50 }
 0x13a   :  { %449 = vst.msk [vmem:[#allocation11 + $0x14] sm:$0xf] %vm307_vm1, %v441_v10 }
 0x13b   :  { %477 = dma.vmem_to_hbm [thread:$0]  %s470_s18, 512, %s472_s21, [#allocation12], %s656_s26, %s656_s26, %s657_s27  }
 0x13c   :  { %651 = dma.done.wait [#allocation4], 512  }
 0x13d   :  { %652 = vsyncadd [#allocation4], 4294966784 }
 0x13e   :  { %653 = dma.done.wait [#allocation12], 512  }
 0x13f   :  { %654 = vsyncadd [#allocation12], 4294966784 }
 0x140   :  { %486 = vsyncpa [#allocation3], 1 }
 0x141   :  { %487 = vsyncpa [#allocation6], 1 }
 0x142   :  { %488 = vsyncpa [#allocation9], 1 }
 0x143   :  { %489 = vsyncpa [#allocation4], 1 }
 0x144   :  { %490 = vsyncpa [#allocation12], 1 }

</bundles_post_ra>
